<compile_context>
chip_gen: v7x
topology: tpu7x:2x2x1
jax: 0.10.0
libtpu: 0.0.40
codegen_flags: <defaults>
</compile_context>

<pallas_src>
import math
from functools import partial

import jax
import jax.numpy as jnp
from jax import lax
from jax.experimental import pallas as pl
from jax.experimental.pallas import tpu as pltpu


def self_attention_kernel(x_ref, wqkv_ref, bqkv_ref, wd_ref, bd_ref,
                          lnw_ref, lnb_ref, o_ref,
                          *, num_heads, head_size, eps):
    # x block: (1, S, H) -> (S, H) for this batch element.
    x = x_ref[0].astype(jnp.float32)          # f32 copy kept for residual / LN
    S, H = x.shape
    d = head_size

    # ---- fused Q|K|V projection: one full-H-contraction bf16 MXU matmul ----
    qkv = jnp.dot(x.astype(jnp.bfloat16), wqkv_ref[...],
                  preferred_element_type=jnp.float32) + bqkv_ref[...]   # (S, 3H) f32

    scale = 1.0 / math.sqrt(d)
    q = (qkv[:, :H] * scale).astype(jnp.bfloat16)   # scale folded into q
    k = qkv[:, H:2 * H].astype(jnp.bfloat16)
    v = qkv[:, 2 * H:].astype(jnp.bfloat16)

    # ---- split heads onto a leading batch axis: (num_heads, S, d) ----------
    # One relayout per tensor here; the attention math itself is a single
    # batched MXU einsum over all heads (no unrolled per-head matmuls).
    def to_heads(t):
        return jnp.stack([t[:, h * d:(h + 1) * d] for h in range(num_heads)],
                         axis=0)
    qh, kh, vh = to_heads(q), to_heads(k), to_heads(v)

    # ---- batched scaled-dot-product attention (no explicit K transpose) ----
    scores = jnp.einsum("hqd,hkd->hqk", qh, kh,
                        preferred_element_type=jnp.float32)             # (nh, S, S)
    m = jnp.max(scores, axis=-1, keepdims=True)
    e = jnp.exp(scores - m)
    l = jnp.sum(e, axis=-1, keepdims=True)
    probs = (e * pl.reciprocal(l, approx=True)).astype(jnp.bfloat16)    # EUP recip
    # attn_dropout: identity (eval mode)
    ctx = jnp.einsum("hqk,hkd->hqd", probs, vh,
                     preferred_element_type=jnp.float32)                # (nh, S, d)

    # ---- merge heads back onto the lane axis + output dense projection -----
    context = jnp.concatenate([ctx[h] for h in range(num_heads)],
                              axis=-1).astype(jnp.bfloat16)             # (S, H)
    hidden = jnp.dot(context, wd_ref[...],
                     preferred_element_type=jnp.float32) + bd_ref[...]
    # out_dropout: identity (eval mode)

    # ---- residual + TF-style LayerNorm (biased var, eps inside sqrt), f32 --
    h = hidden + x
    u = jnp.mean(h, axis=-1, keepdims=True)
    s = jnp.mean((h - u) ** 2, axis=-1, keepdims=True)
    normed = (h - u) * lax.rsqrt(s + eps)                               # EUP rsqrt
    o_ref[0] = (lnw_ref[...] * normed + lnb_ref[...]).astype(o_ref.dtype)


def self_attention_pallas(x, params, *, num_heads, eps=1e-12, interpret=False):
    """x: (B, S, H) float32; params: dict of f32 weights in (in, out) layout."""
    B, S, H = x.shape
    head_size = H // num_heads

    # Host-side packing / casting (done once, outside the kernel).
    wqkv = jnp.concatenate([params["wq"], params["wk"], params["wv"]],
                           axis=1).astype(jnp.bfloat16)                 # (H, 3H)
    bqkv = jnp.concatenate([params["bq"], params["bk"], params["bv"]],
                           axis=1).astype(jnp.float32)                  # (1, 3H)
    wd = params["wd"].astype(jnp.bfloat16)
    bd = params["bd"].astype(jnp.float32)
    lnw = params["ln_w"].astype(jnp.float32)
    lnb = params["ln_b"].astype(jnp.float32)

    kernel = partial(self_attention_kernel,
                     num_heads=num_heads, head_size=head_size, eps=eps)

    full = lambda shape: pl.BlockSpec(shape, lambda b: (0, 0))

    # Explicit VMEM budget from the actual block footprint (weights + double-
    # buffered x/out blocks + in-kernel intermediates), with 2x headroom.
    bf16b, f32b = 2, 4
    weight_bytes = (H * 3 * H + H * H) * bf16b + (3 * H + H + 2 * H) * f32b
    io_bytes = 2 * 2 * S * H * f32b
    inter_bytes = (S * 3 * H + 3 * num_heads * S * head_size
                   + 3 * num_heads * S * S + 4 * S * H) * f32b
    vmem_limit = int(min(max(2 * (weight_bytes + io_bytes + inter_bytes),
                             32 << 20), 64 << 20))

    return pl.pallas_call(
        kernel,
        out_shape=jax.ShapeDtypeStruct((B, S, H), x.dtype),
        grid_spec=pltpu.PrefetchScalarGridSpec(
            num_scalar_prefetch=0,
            grid=(B,),
            in_specs=[
                pl.BlockSpec((1, S, H), lambda b: (b, 0, 0)),   # x
                full((H, 3 * H)), full((1, 3 * H)),             # fused Wqkv, bqkv
                full((H, H)), full((1, H)),                     # Wd, bd
                full((1, H)), full((1, H)),                     # ln_w, ln_b
            ],
            out_specs=pl.BlockSpec((1, S, H), lambda b: (b, 0, 0)),
        ),
        compiler_params=pltpu.CompilerParams(
            dimension_semantics=("parallel",),
            vmem_limit_bytes=vmem_limit,
        ),
        interpret=interpret,
    )(x, wqkv, bqkv, wd, bd, lnw, lnb)


def self_attention_reference(x, params, *, num_heads, eps=1e-12):
    """Plain-JAX f32 reference mirroring the PyTorch forward (eval mode)."""
    B, S, H = x.shape
    d = H // num_heads
    q = x @ params["wq"] + params["bq"]
    k = x @ params["wk"] + params["bk"]
    v = x @ params["wv"] + params["bv"]
    def split(t):  # (B,S,H) -> (B,nh,S,d)
        return t.reshape(B, S, num_heads, d).transpose(0, 2, 1, 3)
    qh, kh, vh = split(q), split(k), split(v)
    scores = jnp.einsum("bnqd,bnkd->bnqk", qh, kh) / math.sqrt(d)
    probs = jax.nn.softmax(scores, axis=-1)
    ctx = jnp.einsum("bnqk,bnkd->bnqd", probs, vh)
    ctx = ctx.transpose(0, 2, 1, 3).reshape(B, S, H)
    hidden = ctx @ params["wd"] + params["bd"]
    h = hidden + x
    u = h.mean(-1, keepdims=True)
    s = ((h - u) ** 2).mean(-1, keepdims=True)
    return params["ln_w"] * ((h - u) / jnp.sqrt(s + eps)) + params["ln_b"]


if __name__ == "__main__":
    # Small shapes consistent with the module: input_size == hidden_size
    # (required by the residual add), 4 heads, head_size = 8.
    B, S, H = 2, 8, 32
    NUM_HEADS = 4

    key = jax.random.PRNGKey(0)
    keys = jax.random.split(key, 10)

    def lin_init(kw, kb, fan_in, fan_out):
        # deterministic init mimicking nn.Linear's uniform(-1/sqrt(fan_in), ...)
        bound = 1.0 / math.sqrt(fan_in)
        w = jax.random.uniform(kw, (fan_in, fan_out), jnp.float32, -bound, bound)
        b = jax.random.uniform(kb, (1, fan_out), jnp.float32, -bound, bound)
        return w, b

    wq, bq = lin_init(keys[0], keys[1], H, H)
    wk, bk = lin_init(keys[2], keys[3], H, H)
    wv, bv = lin_init(keys[4], keys[5], H, H)
    wd, bd = lin_init(keys[6], keys[7], H, H)
    params = {
        "wq": wq, "bq": bq, "wk": wk, "bk": bk, "wv": wv, "bv": bv,
        "wd": wd, "bd": bd,
        "ln_w": jnp.ones((1, H), jnp.float32),
        "ln_b": jnp.zeros((1, H), jnp.float32),
    }

    x = jax.random.normal(keys[8], (B, S, H), jnp.float32)

    out = jax.block_until_ready(self_attention_pallas(x, params, num_heads=NUM_HEADS))
    ref = self_attention_reference(x, params, num_heads=NUM_HEADS)

    assert out.shape == (B, S, H)
    # Kernel uses bf16 matmul operands + approximate EUP reciprocal (per the
    # performance review), so compare against the f32 reference at a
    # bf16-appropriate tolerance.
    max_diff = float(jnp.max(jnp.abs(out - ref)))
    assert jnp.allclose(out, ref, atol=2e-2, rtol=2e-2), (
        f"mismatch vs reference: max abs diff = {max_diff}")

    print("KERNEL_OK")
</pallas_src>

<mosaic_0001>
module attributes {stable_mosaic.version = 11 : i64} {
  func.func @self_attention_kernel(%arg0: i32, %arg1: memref<1x8x32xf32, #tpu.memory_space<vmem>>, %arg2: memref<32x96xbf16, #tpu.memory_space<vmem>>, %arg3: memref<1x96xf32, #tpu.memory_space<vmem>>, %arg4: memref<32x32xbf16, #tpu.memory_space<vmem>>, %arg5: memref<1x32xf32, #tpu.memory_space<vmem>>, %arg6: memref<1x32xf32, #tpu.memory_space<vmem>>, %arg7: memref<1x32xf32, #tpu.memory_space<vmem>>, %arg8: memref<1x8x32xf32, #tpu.memory_space<vmem>>) attributes {dimension_semantics = [#tpu.dimension_semantics<parallel>], iteration_bounds = array<i64: 2>, scalar_prefetch = 0 : i64, scratch_operands = 0 : i64, tpu.core_type = #tpu.core_type<tc>, window_params = [{transform_indices = @transform_0, window_bounds = array<i64: 1, 8, 32>}, {pipeline_mode = #tpu.pipeline_mode<synchronous>, transform_indices = @transform_1, window_bounds = array<i64: 32, 96>}, {pipeline_mode = #tpu.pipeline_mode<synchronous>, transform_indices = @transform_2, window_bounds = array<i64: 1, 96>}, {pipeline_mode = #tpu.pipeline_mode<synchronous>, transform_indices = @transform_3, window_bounds = array<i64: 32, 32>}, {pipeline_mode = #tpu.pipeline_mode<synchronous>, transform_indices = @transform_4, window_bounds = array<i64: 1, 32>}, {pipeline_mode = #tpu.pipeline_mode<synchronous>, transform_indices = @transform_5, window_bounds = array<i64: 1, 32>}, {pipeline_mode = #tpu.pipeline_mode<synchronous>, transform_indices = @transform_6, window_bounds = array<i64: 1, 32>}, {transform_indices = @transform_7, window_bounds = array<i64: 1, 8, 32>}]} {
    %c0 = arith.constant 0 : index
    %c0_0 = arith.constant 0 : index
    %c0_1 = arith.constant 0 : index
    %0 = vector.load %arg1[%c0, %c0_0, %c0_1] : memref<1x8x32xf32, #tpu.memory_space<vmem>>, vector<1x8x32xf32>
    %1 = vector.shape_cast %0 : vector<1x8x32xf32> to vector<8x32xf32>
    %2 = arith.truncf %1 : vector<8x32xf32> to vector<8x32xbf16>
    %c0_2 = arith.constant 0 : index
    %c0_3 = arith.constant 0 : index
    %3 = vector.load %arg2[%c0_2, %c0_3] : memref<32x96xbf16, #tpu.memory_space<vmem>>, vector<32x96xbf16>
    %cst = arith.constant dense<0.000000e+00> : vector<8x96xf32>
    %4 = tpu.matmul %2, %3, %cst {dimension_numbers = #tpu.dot_dimension_numbers<[1], [0], [0], [1], [0, 0, 1, 1], [], []>} : vector<8x32xbf16>, vector<32x96xbf16>, vector<8x96xf32> -> vector<8x96xf32>
    %c0_4 = arith.constant 0 : index
    %c0_5 = arith.constant 0 : index
    %5 = vector.load %arg3[%c0_4, %c0_5] : memref<1x96xf32, #tpu.memory_space<vmem>>, vector<1x96xf32>
    %6 = vector.broadcast %5 : vector<1x96xf32> to vector<8x96xf32>
    %7 = arith.addf %4, %6 : vector<8x96xf32>
    %8 = vector.extract_strided_slice %7 {offsets = [0, 0], sizes = [8, 32], strides = [1, 1]} : vector<8x96xf32> to vector<8x32xf32>
    %cst_6 = arith.constant 0.353553385 : f32
    %9 = vector.broadcast %cst_6 : f32 to vector<8x32xf32>
    %10 = arith.mulf %8, %9 : vector<8x32xf32>
    %11 = arith.truncf %10 : vector<8x32xf32> to vector<8x32xbf16>
    %12 = vector.extract_strided_slice %7 {offsets = [0, 32], sizes = [8, 32], strides = [1, 1]} : vector<8x96xf32> to vector<8x32xf32>
    %13 = arith.truncf %12 : vector<8x32xf32> to vector<8x32xbf16>
    %14 = vector.extract_strided_slice %7 {offsets = [0, 64], sizes = [8, 32], strides = [1, 1]} : vector<8x96xf32> to vector<8x32xf32>
    %15 = arith.truncf %14 : vector<8x32xf32> to vector<8x32xbf16>
    %16 = vector.extract_strided_slice %11 {offsets = [0, 0], sizes = [8, 8], strides = [1, 1]} : vector<8x32xbf16> to vector<8x8xbf16>
    %17 = vector.extract_strided_slice %11 {offsets = [0, 8], sizes = [8, 8], strides = [1, 1]} : vector<8x32xbf16> to vector<8x8xbf16>
    %18 = vector.extract_strided_slice %11 {offsets = [0, 16], sizes = [8, 8], strides = [1, 1]} : vector<8x32xbf16> to vector<8x8xbf16>
    %19 = vector.extract_strided_slice %11 {offsets = [0, 24], sizes = [8, 8], strides = [1, 1]} : vector<8x32xbf16> to vector<8x8xbf16>
    %20 = vector.shape_cast %16 : vector<8x8xbf16> to vector<1x8x8xbf16>
    %21 = vector.shape_cast %17 : vector<8x8xbf16> to vector<1x8x8xbf16>
    %22 = vector.shape_cast %18 : vector<8x8xbf16> to vector<1x8x8xbf16>
    %23 = vector.shape_cast %19 : vector<8x8xbf16> to vector<1x8x8xbf16>
    %24 = tpu.concatenate %20, %21, %22, %23 in 0 : vector<1x8x8xbf16>, vector<1x8x8xbf16>, vector<1x8x8xbf16>, vector<1x8x8xbf16> -> vector<4x8x8xbf16>
    %25 = vector.extract_strided_slice %13 {offsets = [0, 0], sizes = [8, 8], strides = [1, 1]} : vector<8x32xbf16> to vector<8x8xbf16>
    %26 = vector.extract_strided_slice %13 {offsets = [0, 8], sizes = [8, 8], strides = [1, 1]} : vector<8x32xbf16> to vector<8x8xbf16>
    %27 = vector.extract_strided_slice %13 {offsets = [0, 16], sizes = [8, 8], strides = [1, 1]} : vector<8x32xbf16> to vector<8x8xbf16>
    %28 = vector.extract_strided_slice %13 {offsets = [0, 24], sizes = [8, 8], strides = [1, 1]} : vector<8x32xbf16> to vector<8x8xbf16>
    %29 = vector.shape_cast %25 : vector<8x8xbf16> to vector<1x8x8xbf16>
    %30 = vector.shape_cast %26 : vector<8x8xbf16> to vector<1x8x8xbf16>
    %31 = vector.shape_cast %27 : vector<8x8xbf16> to vector<1x8x8xbf16>
    %32 = vector.shape_cast %28 : vector<8x8xbf16> to vector<1x8x8xbf16>
    %33 = tpu.concatenate %29, %30, %31, %32 in 0 : vector<1x8x8xbf16>, vector<1x8x8xbf16>, vector<1x8x8xbf16>, vector<1x8x8xbf16> -> vector<4x8x8xbf16>
    %34 = vector.extract_strided_slice %15 {offsets = [0, 0], sizes = [8, 8], strides = [1, 1]} : vector<8x32xbf16> to vector<8x8xbf16>
    %35 = vector.extract_strided_slice %15 {offsets = [0, 8], sizes = [8, 8], strides = [1, 1]} : vector<8x32xbf16> to vector<8x8xbf16>
    %36 = vector.extract_strided_slice %15 {offsets = [0, 16], sizes = [8, 8], strides = [1, 1]} : vector<8x32xbf16> to vector<8x8xbf16>
    %37 = vector.extract_strided_slice %15 {offsets = [0, 24], sizes = [8, 8], strides = [1, 1]} : vector<8x32xbf16> to vector<8x8xbf16>
    %38 = vector.shape_cast %34 : vector<8x8xbf16> to vector<1x8x8xbf16>
    %39 = vector.shape_cast %35 : vector<8x8xbf16> to vector<1x8x8xbf16>
    %40 = vector.shape_cast %36 : vector<8x8xbf16> to vector<1x8x8xbf16>
    %41 = vector.shape_cast %37 : vector<8x8xbf16> to vector<1x8x8xbf16>
    %42 = tpu.concatenate %38, %39, %40, %41 in 0 : vector<1x8x8xbf16>, vector<1x8x8xbf16>, vector<1x8x8xbf16>, vector<1x8x8xbf16> -> vector<4x8x8xbf16>
    "tpu.trace_start"() <{level = 10 : i32, message = "hqd,hkd->hqk"}> : () -> ()
    %cst_7 = arith.constant dense<0.000000e+00> : vector<4x8x8xf32>
    %43 = tpu.matmul %24, %33, %cst_7 {dimension_numbers = #tpu.dot_dimension_numbers<[2], [2], [1], [1], [0, 0, 0, 1, 1, 1], [0], [0]>} : vector<4x8x8xbf16>, vector<4x8x8xbf16>, vector<4x8x8xf32> -> vector<4x8x8xf32>
    "tpu.trace_stop"() : () -> ()
    %cst_8 = arith.constant dense<0xFF800000> : vector<4x8xf32>
    %44 = vector.multi_reduction <maximumf>, %43, %cst_8 [2] : vector<4x8x8xf32> to vector<4x8xf32>
    %45 = vector.shape_cast %44 : vector<4x8xf32> to vector<4x8x1xf32>
    %46 = vector.broadcast %45 : vector<4x8x1xf32> to vector<4x8x8xf32>
    %47 = arith.subf %43, %46 : vector<4x8x8xf32>
    %48 = math.exp %47 : vector<4x8x8xf32>
    %cst_9 = arith.constant dense<0.000000e+00> : vector<4x8xf32>
    %49 = vector.multi_reduction <add>, %48, %cst_9 [2] : vector<4x8x8xf32> to vector<4x8xf32>
    %50 = vector.shape_cast %49 : vector<4x8xf32> to vector<4x8x1xf32>
    %51 = tpu.reciprocal %50 {approx = true} : vector<4x8x1xf32> -> vector<4x8x1xf32>
    %52 = vector.broadcast %51 : vector<4x8x1xf32> to vector<4x8x8xf32>
    %53 = arith.mulf %48, %52 : vector<4x8x8xf32>
    %54 = arith.truncf %53 : vector<4x8x8xf32> to vector<4x8x8xbf16>
    "tpu.trace_start"() <{level = 10 : i32, message = "hqk,hkd->hqd"}> : () -> ()
    %cst_10 = arith.constant dense<0.000000e+00> : vector<4x8x8xf32>
    %55 = tpu.matmul %54, %42, %cst_10 {dimension_numbers = #tpu.dot_dimension_numbers<[2], [1], [1], [2], [0, 0, 0, 1, 1, 2], [0], [0]>} : vector<4x8x8xbf16>, vector<4x8x8xbf16>, vector<4x8x8xf32> -> vector<4x8x8xf32>
    "tpu.trace_stop"() : () -> ()
    %56 = vector.extract_strided_slice %55 {offsets = [0, 0, 0], sizes = [1, 8, 8], strides = [1, 1, 1]} : vector<4x8x8xf32> to vector<1x8x8xf32>
    %57 = vector.shape_cast %56 : vector<1x8x8xf32> to vector<8x8xf32>
    %58 = vector.extract_strided_slice %55 {offsets = [1, 0, 0], sizes = [1, 8, 8], strides = [1, 1, 1]} : vector<4x8x8xf32> to vector<1x8x8xf32>
    %59 = vector.shape_cast %58 : vector<1x8x8xf32> to vector<8x8xf32>
    %60 = vector.extract_strided_slice %55 {offsets = [2, 0, 0], sizes = [1, 8, 8], strides = [1, 1, 1]} : vector<4x8x8xf32> to vector<1x8x8xf32>
    %61 = vector.shape_cast %60 : vector<1x8x8xf32> to vector<8x8xf32>
    %62 = vector.extract_strided_slice %55 {offsets = [3, 0, 0], sizes = [1, 8, 8], strides = [1, 1, 1]} : vector<4x8x8xf32> to vector<1x8x8xf32>
    %63 = vector.shape_cast %62 : vector<1x8x8xf32> to vector<8x8xf32>
    %64 = tpu.concatenate %57, %59, %61, %63 in 1 : vector<8x8xf32>, vector<8x8xf32>, vector<8x8xf32>, vector<8x8xf32> -> vector<8x32xf32>
    %65 = arith.truncf %64 : vector<8x32xf32> to vector<8x32xbf16>
    %c0_11 = arith.constant 0 : index
    %c0_12 = arith.constant 0 : index
    %66 = vector.load %arg4[%c0_11, %c0_12] : memref<32x32xbf16, #tpu.memory_space<vmem>>, vector<32x32xbf16>
    %cst_13 = arith.constant dense<0.000000e+00> : vector<8x32xf32>
    %67 = tpu.matmul %65, %66, %cst_13 {dimension_numbers = #tpu.dot_dimension_numbers<[1], [0], [0], [1], [0, 0, 1, 1], [], []>} : vector<8x32xbf16>, vector<32x32xbf16>, vector<8x32xf32> -> vector<8x32xf32>
    %c0_14 = arith.constant 0 : index
    %c0_15 = arith.constant 0 : index
    %68 = vector.load %arg5[%c0_14, %c0_15] : memref<1x32xf32, #tpu.memory_space<vmem>>, vector<1x32xf32>
    %69 = vector.broadcast %68 : vector<1x32xf32> to vector<8x32xf32>
    %70 = arith.addf %67, %69 : vector<8x32xf32>
    %71 = arith.addf %70, %1 : vector<8x32xf32>
    %cst_16 = arith.constant dense<0.000000e+00> : vector<8xf32>
    %72 = vector.multi_reduction <add>, %71, %cst_16 [1] : vector<8x32xf32> to vector<8xf32>
    %73 = vector.shape_cast %72 : vector<8xf32> to vector<8x1xf32>
    %cst_17 = arith.constant 3.200000e+01 : f32
    %74 = vector.broadcast %cst_17 : f32 to vector<8x1xf32>
    %75 = arith.divf %73, %74 : vector<8x1xf32>
    %76 = vector.broadcast %75 : vector<8x1xf32> to vector<8x32xf32>
    %77 = arith.subf %71, %76 : vector<8x32xf32>
    %78 = arith.mulf %77, %77 : vector<8x32xf32>
    %cst_18 = arith.constant dense<0.000000e+00> : vector<8xf32>
    %79 = vector.multi_reduction <add>, %78, %cst_18 [1] : vector<8x32xf32> to vector<8xf32>
    %80 = vector.shape_cast %79 : vector<8xf32> to vector<8x1xf32>
    %cst_19 = arith.constant 3.200000e+01 : f32
    %81 = vector.broadcast %cst_19 : f32 to vector<8x1xf32>
    %82 = arith.divf %80, %81 : vector<8x1xf32>
    %83 = vector.broadcast %75 : vector<8x1xf32> to vector<8x32xf32>
    %84 = arith.subf %71, %83 : vector<8x32xf32>
    %cst_20 = arith.constant 9.99999996E-13 : f32
    %85 = vector.broadcast %cst_20 : f32 to vector<8x1xf32>
    %86 = arith.addf %82, %85 : vector<8x1xf32>
    %87 = math.rsqrt %86 : vector<8x1xf32>
    %88 = vector.broadcast %87 : vector<8x1xf32> to vector<8x32xf32>
    %89 = arith.mulf %84, %88 : vector<8x32xf32>
    %c0_21 = arith.constant 0 : index
    %c0_22 = arith.constant 0 : index
    %90 = vector.load %arg6[%c0_21, %c0_22] : memref<1x32xf32, #tpu.memory_space<vmem>>, vector<1x32xf32>
    %91 = vector.broadcast %90 : vector<1x32xf32> to vector<8x32xf32>
    %92 = arith.mulf %91, %89 : vector<8x32xf32>
    %c0_23 = arith.constant 0 : index
    %c0_24 = arith.constant 0 : index
    %93 = vector.load %arg7[%c0_23, %c0_24] : memref<1x32xf32, #tpu.memory_space<vmem>>, vector<1x32xf32>
    %94 = vector.broadcast %93 : vector<1x32xf32> to vector<8x32xf32>
    %95 = arith.addf %92, %94 : vector<8x32xf32>
    %c0_25 = arith.constant 0 : index
    %c0_26 = arith.constant 0 : index
    %c0_27 = arith.constant 0 : index
    %96 = vector.load %arg8[%c0_25, %c0_26, %c0_27] : memref<1x8x32xf32, #tpu.memory_space<vmem>>, vector<1x8x32xf32>
    %97 = vector.shape_cast %96 : vector<1x8x32xf32> to vector<8x32xf32>
    %98 = vector.shape_cast %95 : vector<8x32xf32> to vector<1x8x32xf32>
    tpu.vector_store %arg8[%c0_25, %c0_26, %c0_27], %98 {strides = array<i32>} : memref<1x8x32xf32, #tpu.memory_space<vmem>>, vector<1x8x32xf32>,
    return
  }
  func.func @transform_0(%arg0: i32) -> (i32, i32, i32) {
    %c0_i32 = arith.constant 0 : i32
    %c0_i32_0 = arith.constant 0 : i32
    %c0_i32_1 = arith.constant 0 : i32
    return %arg0, %c0_i32, %c0_i32_0 : i32, i32, i32
  }
  func.func @transform_1(%arg0: i32) -> (i32, i32) {
    %c0_i32 = arith.constant 0 : i32
    %c0_i32_0 = arith.constant 0 : i32
    %c0_i32_1 = arith.constant 0 : i32
    return %c0_i32, %c0_i32_0 : i32, i32
  }
  func.func @transform_2(%arg0: i32) -> (i32, i32) {
    %c0_i32 = arith.constant 0 : i32
    %c0_i32_0 = arith.constant 0 : i32
    %c0_i32_1 = arith.constant 0 : i32
    return %c0_i32, %c0_i32_0 : i32, i32
  }
  func.func @transform_3(%arg0: i32) -> (i32, i32) {
    %c0_i32 = arith.constant 0 : i32
    %c0_i32_0 = arith.constant 0 : i32
    %c0_i32_1 = arith.constant 0 : i32
    return %c0_i32, %c0_i32_0 : i32, i32
  }
  func.func @transform_4(%arg0: i32) -> (i32, i32) {
    %c0_i32 = arith.constant 0 : i32
    %c0_i32_0 = arith.constant 0 : i32
    %c0_i32_1 = arith.constant 0 : i32
    return %c0_i32, %c0_i32_0 : i32, i32
  }
  func.func @transform_5(%arg0: i32) -> (i32, i32) {
    %c0_i32 = arith.constant 0 : i32
    %c0_i32_0 = arith.constant 0 : i32
    %c0_i32_1 = arith.constant 0 : i32
    return %c0_i32, %c0_i32_0 : i32, i32
  }
  func.func @transform_6(%arg0: i32) -> (i32, i32) {
    %c0_i32 = arith.constant 0 : i32
    %c0_i32_0 = arith.constant 0 : i32
    %c0_i32_1 = arith.constant 0 : i32
    return %c0_i32, %c0_i32_0 : i32, i32
  }
  func.func @transform_7(%arg0: i32) -> (i32, i32, i32) {
    %c0_i32 = arith.constant 0 : i32
    %c0_i32_0 = arith.constant 0 : i32
    %c0_i32_1 = arith.constant 0 : i32
    return %arg0, %c0_i32, %c0_i32_0 : i32, i32, i32
  }
}

</mosaic_0001>

<bundles_post_ra>
// kernel: tpu_custom_call.1
= control target key start
LH: loop header
LB: loop body
LE: loop exit
PB: predicated region body
PF: predicated region fallthrough
CT: control target
= control target key end

     0   :  { %12 = vsyncpa [#allocation3], 0  ;;  %s1833_s0 = inlined_call_operand.hbm [shape: f32[2,8,32], index: 0, kind: input, shape index: {}]   ;;  %s1834_s1 = inlined_call_operand.hbm [shape: bf16[32,96], index: 1, kind: input, shape index: {}]   ;;  %s1835_s2 = inlined_call_operand.vmem [shape: f32[1,96], index: 2, kind: input, shape index: {}]   ;;  %s1836_s3 = inlined_call_operand.hbm [shape: bf16[32,32], index: 3, kind: input, shape index: {}]   ;;  %s1837_s4 = inlined_call_operand.vmem [shape: f32[1,32], index: 4, kind: input, shape index: {}]   ;;  %s1838_s5 = inlined_call_operand.vmem [shape: f32[1,32], index: 5, kind: input, shape index: {}]   ;;  %s1839_s6 = inlined_call_operand.vmem [shape: f32[1,32], index: 6, kind: input, shape index: {}]   ;;  %s1840_s7 = inlined_call_operand.hbm [shape: f32[2,8,32], index: 7, kind: output, shape index: {}]  }
   0x1   :  { %14 = vsyncpa [#allocation3 + $0x1], 0 }
   0x2   :  { %15 = vsyncpa [#allocation6], 0 }
   0x3   :  { %16 = vsyncpa [#allocation4], 0 }
   0x4   :  { %18 = vsyncpa [#allocation4 + $0x1], 0  ;;  %s1498_s24 = smov 0   ;;  %s1500_s25 = smov 0  }
   0x5   :  { %s1502_s26 = smov 0   ;;  %s1504_s27 = smov 0  }
   0x6 LB: > { %s1519_s28 = sadd.s32 4294967295, %s1440_s27   ;;  %s1063_s29 = sadd.s32 4294967294, %s1440_s27   ;;  %s1440_s27 = sphi %s1504_s27, %s1860_s27   ;;  %s1436_s26 = sphi %s1502_s26, %s1859_s26   ;;  %s1432_s25 = sphi %s1500_s25, %s1858_s25   ;;  %s1428_s24 = sphi %s1498_s24, %s1857_s24  }
   0x7   : > { %p44_p0 = scmp.ne.s32.totalorder %s1432_s25, %s1428_s24  ;;  %p1841_p1 = scmp.eq.s32.totalorder %s1519_s28, 0 }
   0x8   : > { %p200_p3 = scmp.eq.s32.totalorder %s1063_s29, 1  ;;  %p1064_p5 = scmp.ge.s32.totalorder %s1440_s27, 1 }
   0x9   : > { %p1528_p4 = por %p1841_p1, %p44_p0  ;;  %p207_p7 = scmp.lt.s32.totalorder %s1440_s27, 3 }
   0xa   : > { %p1533_p6 = por %p200_p3, %p44_p0  ;;  %s1442_s10 = smov [#allocation5]  }
   0xb   : > { %s1844_s30 = scalar_select %p1528_p4, 1, 0 }
   0xc   : > { %s1845_s8 = scalar_select %p1533_p6, 1, 0 }
   0xd   : > { %p1538_p8 = pnand %p1064_p5, %p207_p7  ;;  %s219_s11 = sshll.u32 %s1442_s10, 4  ;;  %s1542_s11 = int_to_ptr.vmem [resolvable:$true] %s219_s11 }
   0xe   : > { %s1443_s13 = smov [#allocation7]   ;;  %s1284_s17 = scalar_lea.hbm %s1834_s1, 256 }
   0xf   : > { %p1195_p9 = pneg %p1538_p8  ;;  %s235_s14 = sshll.u32 %s1443_s13, 4  ;;  %s1553_s14 = int_to_ptr.vmem [resolvable:$true] %s235_s14 }
  0x10   : > { %p1285_p12 = scmp.ne.s32.totalorder %s1834_s1, %s1284_s17  ;;  %p1291_p5 = scmp.lt.u32.totalorder %s1284_s17, %s1834_s1 }
  0x11   : > { %p1549_p11 = pnand %p1195_p9, %p1841_p1 }
  0x13   : > { %p1286_p13 = pneg %p1549_p11 }
  0x15   : > { %p1287_p0 = pnand %p1286_p13, %p1285_p12 }
  0x17   : > { %p1288_p3 = pneg %p1287_p0 }
  0x19   : > { %p1293_p7 = pnand %p1291_p5, %p1288_p3 }
  0x1b   : > { %1296 = shalt.err (!%p1293_p7)
}
  0x1c   : > { %s1297_s22 = scalar_lea.vmem %s1542_s11, 256  ;;  %p1305_p2 = scmp.lt.s32.totalorder %s1542_s11, %s1542_s11 }
  0x1d   : > { %p1298_p9 = scmp.ne.s32.totalorder %s1542_s11, %s1297_s22  ;;  %p1306_p12 = scmp.lt.s32.totalorder %s1297_s22, %s1297_s22 }
  0x1f   : > { %p1300_p10 = pnand %p1298_p9, %p1286_p13  ;;  %p1307_p0 = por %p1306_p12, %p1305_p2 }
  0x21   : > { %p1301_p1 = pneg %p1300_p10 }
  0x23   : > { %p1308_p6 = pnand %p1307_p0, %p1301_p1 }
  0x25   : > { %1311 = shalt.err (!%p1308_p6)
}
  0x26   : > { %s1444_s23 = smov 64   ;;  %s1445_s29 = smov 4  }
  0x27   : > { %1198 = dma.hbm_to_vmem [thread:$0]  (!%p1549_p11), %s1834_s1, 256, %s1542_s11, [#allocation6], %s1444_s23, %s1444_s23, %s1445_s29  }
  0x28   : > { %s1312_s17 = scalar_lea.hbm %s1836_s3, 256 }
  0x29   : > { %p1313_p2 = scmp.ne.s32.totalorder %s1836_s3, %s1312_s17  ;;  %p1319_p10 = scmp.lt.u32.totalorder %s1312_s17, %s1836_s3 }
  0x2b   : > { %p1315_p1 = pnand %p1313_p2, %p1286_p13 }
  0x2d   : > { %p1316_p6 = pneg %p1315_p1 }
  0x2f   : > { %p1321_p3 = pnand %p1319_p10, %p1316_p6 }
  0x31   : > { %1324 = shalt.err (!%p1321_p3)
}
  0x32   : > { %s1325_s11 = scalar_lea.vmem %s1553_s14, 256  ;;  %p1333_p12 = scmp.lt.s32.totalorder %s1553_s14, %s1553_s14 }
  0x33   : > { %p1326_p5 = scmp.ne.s32.totalorder %s1553_s14, %s1325_s11  ;;  %p1334_p0 = scmp.lt.s32.totalorder %s1325_s11, %s1325_s11 }
  0x35   : > { %p1328_p7 = pnand %p1326_p5, %p1286_p13  ;;  %p1335_p2 = por %p1334_p0, %p1333_p12 }
  0x37   : > { %p1329_p9 = pneg %p1328_p7 }
  0x39   : > { %p1336_p1 = pnand %p1335_p2, %p1329_p9 }
  0x3b   : > { %1339 = shalt.err (!%p1336_p1)
}
  0x3c   : > { %1201 = dma.hbm_to_vmem [thread:$0]  (!%p1549_p11), %s1836_s3, 256, %s1553_s14, [#allocation6], %s1444_s23, %s1444_s23, %s1445_s29  }
  0x3d   : > { %s1608_s13 = sadd.s32 1, %s1440_s27   ;;  %s31_s12 = sadd.s32 1, %s1436_s26 }
  0x3e   : > { %s28_s15 = ssub.s32 %s1440_s27, %s1608_s13  ;;  %p38_p13 = scmp.ne.s32.totalorder %s1436_s26, %s1432_s25 }
  0x3f   : > { %p29_p6 = scmp.eq.s32.totalorder %s28_s15, 0  ;;  %p39_p10 = scmp.eq.s32.totalorder %s1440_s27, 0 }
  0x40   : > { %p1848_p3 = scmp.eq.s32.totalorder %s1519_s28, 1  ;;  %p1212_p7 = scmp.lt.s32.totalorder %s1440_s27, 2 }
  0x41   : > { %s1624_s17 = scalar_select %p29_p6, %s1436_s26, %s31_s12  }
  0x42   : > { %p1618_p5 = por %p1848_p3, %p38_p13  ;;  %p40_p9 = por %p39_p10, %p38_p13 }
  0x43   : > { %s258_s18 = sand.u32 1, %s1436_s26   ;;  %s1069_s14 = sshll.u32 %s1440_s27, 7 }
  0x44   : > { %s1849_s16 = scalar_select %p1618_p5, 1, 0 }
  0x45   : > { %s1068_s19 = sshll.u32 %s258_s18, 3  ;;  %s1631_s20 = scalar_lea.hbm %s1833_s0, %s1069_s14 }
  0x46   : > { %s262_s21 = scalar_lea.vmem [#allocation2], %s1068_s19  ;;  %p1635_p11 = pnand %p1212_p7, %p40_p9 }
  0x47   : > { %s269_s11 = sshll.u32 %s262_s21, 4  ;;  %s259_s10 = scalar_lea.sflag [#allocation3], %s258_s18  ;;  %s1633_s11 = int_to_ptr.vmem [resolvable:$true] %s269_s11 }
  0x48   : > { %s1340_s12 = scalar_lea.hbm %s1631_s20, 128  ;;  %p1342_p0 = pneg %p1635_p11 }
  0x49   : > { %p1341_p12 = scmp.ne.s32.totalorder %s1631_s20, %s1340_s12  ;;  %s1345_s14 = scalar_lea.hbm %s1833_s0, 256 }
  0x4a   : > { %p1346_p13 = scmp.lt.u32.totalorder %s1631_s20, %s1833_s0  ;;  %p1347_p6 = scmp.lt.u32.totalorder %s1345_s14, %s1340_s12 }
  0x4b   : > { %p1343_p2 = pnand %p1342_p0, %p1341_p12  ;;  %p1349_p3 = scmp.lt.u32.totalorder %s1340_s12, %s1631_s20 }
  0x4c   : > { %p1348_p10 = por %p1347_p6, %p1346_p13 }
  0x4d   : > { %p1344_p1 = pneg %p1343_p2 }
  0x4e   : > { %p1350_p7 = por %p1349_p3, %p1348_p10 }
  0x50   : > { %p1351_p9 = pnand %p1350_p7, %p1344_p1 }
  0x52   : > { %1354 = shalt.err (!%p1351_p9)
}
  0x53   : > { %s1355_s18 = scalar_lea.vmem %s1633_s11, 128  ;;  %s1446_s21 = smov [#allocation2]  }
  0x54   : > { %p1356_p12 = scmp.ne.s32.totalorder %s1633_s11, %s1355_s18  ;;  %s1360_s15 = sshll.u32 %s1446_s21, 4  ;;  %s1361_s15 = int_to_ptr.vmem [resolvable:$false] %s1360_s15 }
  0x55   : > { %s1362_s19 = scalar_lea.vmem %s1361_s15, 256  ;;  %p1363_p4 = scmp.lt.s32.totalorder %s1633_s11, %s1361_s15 }
  0x56   : > { %p1358_p2 = pnand %p1356_p12, %p1342_p0  ;;  %p1364_p13 = scmp.lt.s32.totalorder %s1362_s19, %s1355_s18 }
  0x58   : > { %p1359_p5 = pneg %p1358_p2  ;;  %p1365_p6 = por %p1364_p13, %p1363_p4 }
  0x5a   : > { %p1366_p10 = pnand %p1365_p6, %p1359_p5 }
  0x5c   : > { %1369 = shalt.err (!%p1366_p10)
}
  0x5d   : > { %1205 = dma.hbm_to_vmem [thread:$0]  (!%p1635_p11), %s1631_s20, 128, %s1633_s11, %s259_s10  }
  0x5e   : > { %278 = sbr.rel (%p1538_p8) target bundleno = 1979 (0x7bb), region = 48  ;;  %s1667_s12 = sand.u32 (!%p1538_p8), 1, %s1432_s25  }
  0x5f   : > { %s1071_s14 = sshll.u32 (!%p1538_p8), %s1667_s12, 3  ;;  %s281_s23 = scalar_lea.sflag (!%p1538_p8), [#allocation3], %s1667_s12 }
  0x60   : > { %s284_s29 = scalar_lea.vmem (!%p1538_p8), [#allocation2], %s1071_s14  ;;  %p1851_p4 = scmp.ne.s32.totalorder (!%p1538_p8), %s1844_s30, 0 }
  0x65   : > { %1415 = dma.done.wait (%p1851_p4), %s281_s23, 128  }
  0x66   : > { %1417 = vsyncadd (%p1851_p4), %s281_s23, 4294967168  ;;  %p1852_p5 = scmp.eq.s32.totalorder %s1519_s28, 0 }
  0x68   : > { %1419 = dma.done.wait (%p1852_p5), [#allocation6], 512   ;;  %p1853_p8 = pmov %p1852_p5 }
  0x69   : > { %v1447_v0 = vmov 0.0   ;;  %vm1448_vm0 = vmmov 0   ;;  %v1262_v1 = vld [vmem:[#allocation5] sm:$0xff]   ;;  %v1263_v2 = vld [vmem:[#allocation5 + $0x8] sm:$0xff]   ;;  %v1687_v3 = vld [vmem:[%s284_s29] sm:$0xff]  ;;  %vm349_vm1 = vcmask 261120  }
  0x6a   : > { %1421 = vsyncadd (%p1853_p8), [#allocation6], 4294966784  ;;  %1119 = vmatprep.subr.bf16.mxu0 %v1447_v0  ;;  %1123 = vmatprep.mubr.msk.bf16.mxu0 %vm1448_vm0, %v1447_v0  ;;  %v325_v4 = vpack.c.bf16 %v1687_v3, %v1687_v3  ;;  %v1075_v5 = vld [vmem:[%s1835_s2] ss:$0 sm:$0xff]  ;;  %s1449_s20 = smov 104   ;;  %s1450_s11 = smov 120  }
  0x6b   : > { %1127 = vmatprep.subr.bf16.mxu1 %v1447_v0  ;;  %1129 = vmatprep.mubr.msk.bf16.mxu1 %vm1448_vm0, %v1447_v0  ;;  %s1451_s22 = smov 96   ;;  %s1452_s10 = smov 112   ;;  %vm412_vm2 = vcmask 64512   ;;  %vm656_vm3 = vcmask 1043456   ;;  %vm857_vm4 = vcmask 130048   ;;  %vm859_vm5 = vcmask 195584  }
  0x6c   : > { %1120 = vmatpush3.bf16.msra.mxu0 %v1262_v1  ;;  %s1453_s18 = smov 64   ;;  %s1454_s21 = smov 8  }
  0x6d   : > { %1121 = vmatprep.subr.bf16.mxu0 %v1447_v0  ;;  %s1455_s15 = smov 16   ;;  %s1456_s19 = smov 24  }
  0x6e   : > { %s961_s23 = scalar_lea.sflag [#allocation4], %s1667_s12  ;;  %p1854_p0 = scmp.ne.s32.totalorder %s1849_s16, 0 }
  0x70   : > { %1122 = vmatpush3.bf16.msra.mxu0 %v1263_v2 }
  0x71   : > { %1133 = vmatprep.subr.bf16.mxu0 %v1447_v0 }
  0x73   : > { %1124 = vmatmul.mubr.msk.bf16.vlgmr.msra.gmra.mrb[0].mxu0 %vm349_vm1, %v325_v4 }
  0x74   : > { %1135 = vmatprep.mubr.msk.bf16.mxu0 %vm1448_vm0, %v1447_v0 }
 0x146   : > { %v387_v6 = vpop.f32.mrb[0].mxu0 }
 0x147   : > { %v388_v7 = vadd.f32 %v1075_v5, %v387_v6  ;;  %v1125_v8 = vpop.f32.mrb[1].mxu0 }
 0x148   : > { %v390_v9 = vpop.f32.mrb[2].mxu0 }
 0x149   : > { %v1699_v10 = vpack.c.bf16 %v388_v7, %v388_v7  ;;  %v1126_v11 = vpop.f32.mrb[3].mxu0  ;;  %v393_v12 = vmul.f32 0.35355338, %v388_v7 }
 0x14b   : > { %408 = vrot.lane.b32.xlu1 %v1699_v10, %s1449_s20  ;;  %404 = vrot.lane.b32.xlu0 %v1699_v10, %s1450_s11  ;;  %v394_v15 = vpack.c.bf16 %v393_v12, %v393_v12 }
 0x14f   : > { %410 = vrot.lane.b32.xlu1 %v1699_v10, %s1451_s22  ;;  %406 = vrot.lane.b32.xlu0 %v1699_v10, %s1452_s10 }
 0x1bd   : > { %v1705_v13 = vpop.permute.xlu1 %408  ;;  %v1707_v14 = vpop.permute.xlu0 %404 }
 0x1be   : > { %459 = vrot.lane.b32.xlu0 %v1707_v14, %s1451_s22 }
 0x1c1   : > { %v411_v16 = vpop.permute.xlu1 %410  ;;  %v1710_v17 = vpop.permute.xlu0 %406 }
 0x1c2   : > { %507 = vrot.lane.b32.xlu1 %v1710_v17, %s1451_s22  ;;  %397 = vrot.lane.b32.xlu0 %v394_v15, %s1450_s11  ;;  %v417_v18 = vsel %vm412_vm2, %v411_v16, 0 }
 0x1c3   : > { %1128 = vmatpush3.bf16.xpose.msra.mxu1 %v417_v18 }
 0x1c4   : > { %1139 = vmatprep.subr.bf16.mxu1 %v1447_v0 }
 0x1c6   : > { %555 = vrot.lane.b32.xlu1 %v1705_v13, %s1451_s22  ;;  %399 = vrot.lane.b32.xlu0 %v394_v15, %s1452_s10  ;;  %s1094_s22 = sshll.u32 %s1519_s28, 7  ;;  %s322_s10 = scalar_lea.vmem [#allocation8], %s1071_s14 }
 0x1c7   : > { %s1457_s28 = smov [#allocation8]  }
 0x1c8   : > { %s1374_s14 = sshll.u32 %s1457_s28, 4  ;;  %s1375_s14 = int_to_ptr.vmem [resolvable:$false] %s1374_s14 }
 0x1c9   : > { %s1376_s30 = scalar_lea.vmem %s1375_s14, 256 }
 0x1ca   : > { %401 = vrot.lane.b32.xlu1 %v394_v15, %s1449_s20  ;;  %1130 = vmatmul.mubr.msk.bf16.vlgmr.msra.gmra.mrb[0].mxu1 %vm412_vm2, %v394_v15 }
 0x1cb   : > { %1141 = vmatprep.mubr.msk.bf16.mxu1 %vm1448_vm0, %v1447_v0 }
 0x230   : > { %v460_v19 = vpop.permute.xlu0 %459 }
 0x231   : > { %v465_v20 = vsel %vm412_vm2, %v460_v19, 0 }
 0x232   : > { %1134 = vmatpush3.bf16.xpose.msra.mxu0 %v465_v20 }
 0x233   : > { %1145 = vmatprep.subr.bf16.mxu0 %v1447_v0 }
 0x234   : > { %v508_v21 = vpop.permute.xlu1 %507  ;;  %v398_v23 = vpop.permute.xlu0 %397 }
 0x235   : > { %v513_v22 = vsel %vm412_vm2, %v508_v21, 0 }
 0x236   : > { %1140 = vmatpush3.bf16.xpose.msra.mxu1 %v513_v22 }
 0x237   : > { %1151 = vmatprep.subr.bf16.mxu1 %v1447_v0 }
 0x238   : > { %v556_v24 = vpop.permute.xlu1 %555  ;;  %v400_v26 = vpop.permute.xlu0 %399 }
 0x239   : > { %v561_v25 = vsel %vm412_vm2, %v556_v24, 0  ;;  %1136 = vmatmul.mubr.msk.bf16.vlgmr.msra.gmra.mrb[4].mxu0 %vm412_vm2, %v398_v23 }
 0x23a   : > { %1146 = vmatpush3.bf16.xpose.msra.mxu0 %v561_v25  ;;  %1147 = vmatprep.mubr.msk.bf16.mxu0 %vm1448_vm0, %v1447_v0 }
 0x23b   : > { %1157 = vmatprep.subr.bf16.mxu0 %v1447_v0 }
 0x23c   : > { %v402_v27 = vpop.permute.xlu1 %401 }
 0x23d   : > { %1142 = vmatmul.mubr.msk.bf16.vlgmr.msra.gmra.mrb[4].mxu1 %vm412_vm2, %v400_v26 }
 0x23e   : > { %1153 = vmatprep.mubr.msk.bf16.mxu1 %vm1448_vm0, %v1447_v0 }
 0x241   : > { %1148 = vmatmul.mubr.msk.bf16.vlgmr.msra.gmra.mrb[8].mxu0 %vm412_vm2, %v402_v27 }
 0x242   : > { %1159 = vmatprep.mubr.msk.bf16.mxu0 %vm1448_vm0, %v1447_v0 }
 0x29d   : > { %v453_v28 = vpop.f32.mrb[0].mxu1 }
 0x29e   : > { %v1131_v29 = vpop.f32.mrb[1].mxu1  ;;  %v603_v30 = vsel %vm412_vm2, %v453_v28, -inf }
 0x29f   : > { %604 = vmax.xlane.f32.xlu0 %v603_v30  ;;  %v456_v31 = vpop.f32.mrb[2].mxu1 }
 0x2a0   : > { %v1132_v32 = vpop.f32.mrb[3].mxu1 }
 0x30c   : > { %v501_v33 = vpop.f32.mrb[4].mxu0 }
 0x30d   : > { %v1137_v34 = vpop.f32.mrb[5].mxu0  ;;  %v606_v35 = vsel %vm412_vm2, %v501_v33, -inf }
 0x30e   : > { %607 = vmax.xlane.f32.xlu1 %v606_v35  ;;  %v504_v36 = vpop.f32.mrb[6].mxu0  ;;  %v1264_v34 = vld [vmem:[#allocation7] sm:$0xff]   ;;  %v1265_v35 = vld [vmem:[#allocation7 + $0x8] sm:$0xff]  }
 0x30f   : > { %v1138_v37 = vpop.f32.mrb[7].mxu0 }
 0x310   : > { %v549_v38 = vpop.f32.mrb[4].mxu1 }
 0x311   : > { %v1143_v39 = vpop.f32.mrb[5].mxu1  ;;  %v609_v40 = vsel %vm412_vm2, %v549_v38, -inf }
 0x312   : > { %610 = vmax.xlane.f32.xlu0 %v609_v40  ;;  %v552_v41 = vpop.f32.mrb[6].mxu1 }
 0x313   : > { %v1144_v42 = vpop.f32.mrb[7].mxu1 }
 0x314   : > { %v597_v43 = vpop.f32.mrb[8].mxu0 }
 0x315   : > { %v1149_v44 = vpop.f32.mrb[9].mxu0  ;;  %v612_v45 = vsel %vm412_vm2, %v597_v43, -inf }
 0x316   : > { %613 = vmax.xlane.f32.xlu0 %v612_v45  ;;  %v600_v46 = vpop.f32.mrb[10].mxu0 }
 0x317   : > { %v1150_v47 = vpop.f32.mrb[11].mxu0 }
 0x31f   : > { %651 = vrot.lane.b32.xlu1 %v1699_v10, %s1453_s18 }
 0x32c   : > { %v605_v48 = vpop.xlane.xlu0 %604 }
 0x32d   : > { %v615_v49 = vsub.f32 %v453_v28, %v605_v48 }
 0x32f   : > { %v619_v50 = vmul.f32 1.442695, %v615_v49 }
 0x331   : > { %1266 = vpow2.f32 %v619_v50 }
 0x33b   : > { %v1267_v51 = vpop.eup %1266 }
 0x33c   : > { %v627_v52 = vsel %vm412_vm2, %v1267_v51, 0.0 }
 0x343   : > { %628 = vadd.xlane.f32.xlu1 %v627_v52 }
 0x39b   : > { %v608_v53 = vpop.xlane.xlu1 %607 }
 0x39c   : > { %v616_v54 = vsub.f32 %v501_v33, %v608_v53 }
 0x39e   : > { %v621_v55 = vmul.f32 1.442695, %v616_v54  ;;  %v1087_v54 = vld [vmem:[%s1837_s4] ss:$0 sm:$0xff] }
 0x39f   : > { %v611_v56 = vpop.xlane.xlu0 %610  ;;  %v652_v57 = vpop.permute.xlu1 %651 }
 0x3a0   : > { %1268 = vpow2.f32 %v621_v55  ;;  %v617_v58 = vsub.f32 %v549_v38, %v611_v56  ;;  %v658_v59 = vsel %vm656_vm3, %v652_v57, 0 }
 0x3a1   : > { %1152 = vmatpush3.bf16.msra.mxu1 %v658_v59 }
 0x3a2   : > { %v623_v60 = vmul.f32 1.442695, %v617_v58  ;;  %1163 = vmatprep.subr.bf16.mxu1 %v1447_v0 }
 0x3a3   : > { %v614_v61 = vpop.xlane.xlu0 %613 }
 0x3a4   : > { %1270 = vpow2.f32 %v623_v60  ;;  %v618_v62 = vsub.f32 %v597_v43, %v614_v61 }
 0x3a6   : > { %v625_v63 = vmul.f32 1.442695, %v618_v62 }
 0x3a8   : > { %1272 = vpow2.f32 %v625_v63 }
 0x3aa   : > { %v1269_v1 = vpop.eup %1268 }
 0x3ab   : > { %v630_v2 = vsel %vm412_vm2, %v1269_v1, 0.0 }
 0x3ac   : > { %631 = vadd.xlane.f32.xlu0 %v630_v2 }
 0x3ae   : > { %v1271_v4 = vpop.eup %1270 }
 0x3af   : > { %v633_v5 = vsel %vm412_vm2, %v1271_v4, 0.0 }
 0x3b0   : > { %634 = vadd.xlane.f32.xlu1 %v633_v5 }
 0x3b2   : > { %v1273_v6 = vpop.eup %1272 }
 0x3b3   : > { %v636_v7 = vsel %vm412_vm2, %v1273_v6, 0.0 }
 0x3b4   : > { %637 = vadd.xlane.f32.xlu0 %v636_v7 }
 0x3c1   : > { %748 = vrot.lane.b32.xlu1 %v1710_v17, %s1453_s18 }
 0x3c5   : > { %796 = vrot.lane.b32.xlu1 %v1705_v13, %s1453_s18 }
 0x3ca   : > { %700 = vrot.lane.b32.xlu0 %v1707_v14, %s1453_s18  ;;  %s974_s18 = sshll.u32 %s322_s10, 4  ;;  %s1790_s18 = int_to_ptr.vmem [resolvable:$true] %s974_s18 }
 0x3cb   : > { %s1370_s29 = scalar_lea.vmem %s1790_s18, 128  ;;  %p1377_p7 = scmp.lt.s32.totalorder %s1790_s18, %s1375_s14 }
 0x3cc   : > { %p1371_p11 = scmp.ne.s32.totalorder %s1790_s18, %s1370_s29  ;;  %p1378_p9 = scmp.lt.s32.totalorder %s1376_s30, %s1370_s29 }
 0x3ce   : > { %p1372_p1 = pnand %p1371_p11, %p1854_p0  ;;  %p1379_p12 = por %p1378_p9, %p1377_p7 }
 0x3d0   : > { %v629_v8 = vpop.xlane.xlu1 %628  ;;  %p1373_p3 = pneg %p1372_p1 }
 0x3d1   : > { %1274 = vrcp.f32 %v629_v8 }
 0x3d2   : > { %p1380_p2 = pnand %p1379_p12, %p1373_p3 }
 0x3db   : > { %v1275_v9 = vpop.eup %1274 }
 0x3dc   : > { %v643_v10 = vmul.f32 %v1275_v9, %v1267_v51 }
 0x3de   : > { %v647_v11 = vpack.c.bf16 %v643_v10, %v643_v10  ;;  %v1092_v10 = vld [vmem:[%s1839_s6] ss:$0 sm:$0xff] }
 0x3e0   : > { %1154 = vmatmul.mubr.msk.bf16.vlgmr.msra.gmra.mrb[8].mxu1 %vm412_vm2, %v647_v11 }
 0x3e1   : > { %1165 = vmatprep.mubr.msk.bf16.mxu1 %vm1448_vm0, %v1447_v0 }
 0x439   : > { %v632_v12 = vpop.xlane.xlu0 %631 }
 0x43a   : > { %1276 = vrcp.f32 %v632_v12 }
 0x43d   : > { %v635_v15 = vpop.xlane.xlu1 %634 }
 0x43e   : > { %1278 = vrcp.f32 %v635_v15 }
 0x441   : > { %v749_v16 = vpop.permute.xlu1 %748  ;;  %v638_v17 = vpop.xlane.xlu0 %637 }
 0x442   : > { %v754_v13 = vsel %vm656_vm3, %v749_v16, 0  ;;  %1280 = vrcp.f32 %v638_v17 }
 0x443   : > { %1164 = vmatpush3.bf16.msra.mxu1 %v754_v13 }
 0x444   : > { %v1277_v14 = vpop.eup %1276  ;;  %1175 = vmatprep.subr.bf16.mxu1 %v1447_v0 }
 0x445   : > { %v644_v18 = vmul.f32 %v1277_v14, %v1269_v1  ;;  %v701_v19 = vpop.permute.xlu0 %700  ;;  %v797_v21 = vpop.permute.xlu1 %796 }
 0x446   : > { %v706_v20 = vsel %vm656_vm3, %v701_v19, 0  ;;  %v802_v25 = vsel %vm656_vm3, %v797_v21, 0 }
 0x447   : > { %1158 = vmatpush3.bf16.msra.mxu0 %v706_v20  ;;  %v648_v22 = vpack.c.bf16 %v644_v18, %v644_v18 }
 0x448   : > { %v1279_v23 = vpop.eup %1278  ;;  %1169 = vmatprep.subr.bf16.mxu0 %v1447_v0 }
 0x449   : > { %v645_v24 = vmul.f32 %v1279_v23, %v1271_v4 }
 0x44a   : > { %1160 = vmatmul.mubr.msk.bf16.vlgmr.msra.gmra.mrb[12].mxu0 %vm412_vm2, %v648_v22 }
 0x44b   : > { %1170 = vmatpush3.bf16.msra.mxu0 %v802_v25  ;;  %v649_v26 = vpack.c.bf16 %v645_v24, %v645_v24  ;;  %1171 = vmatprep.mubr.msk.bf16.mxu0 %vm1448_vm0, %v1447_v0 }
 0x44c   : > { %v1281_v27 = vpop.eup %1280 }
 0x44d   : > { %v646_v28 = vmul.f32 %v1281_v27, %v1273_v6  ;;  %1166 = vmatmul.mubr.msk.bf16.vlgmr.msra.gmra.mrb[12].mxu1 %vm412_vm2, %v649_v26 }
 0x44e   : > { %1179 = vmatprep.mubr.msk.bf16.mxu1 %vm1448_vm0, %v1447_v0  ;;  %1176 = vmatpush3.bf16.msra.mxu1 %v1264_v34 }
 0x44f   : > { %v650_v29 = vpack.c.bf16 %v646_v28, %v646_v28  ;;  %1177 = vmatprep.subr.bf16.mxu1 %v1447_v0 }
 0x452   : > { %1172 = vmatmul.mubr.msk.bf16.vlgmr.msra.gmra.mrb[16].mxu0 %vm412_vm2, %v650_v29  ;;  %1178 = vmatpush3.bf16.msra.mxu1 %v1265_v35 }
 0x4b3   : > { %v694_v30 = vpop.f32.mrb[8].mxu1 }
 0x4b4   : > { %v1155_v31 = vpop.f32.mrb[9].mxu1 }
 0x4b5   : > { %v697_v32 = vpop.f32.mrb[10].mxu1 }
 0x4b6   : > { %v1156_v33 = vpop.f32.mrb[11].mxu1 }
 0x51d   : > { %v742_v36 = vpop.f32.mrb[12].mxu0 }
 0x51e   : > { %845 = vrot.lane.b32.xlu0 %v742_v36, %s1454_s21  ;;  %v1161_v37 = vpop.f32.mrb[13].mxu0 }
 0x51f   : > { %v745_v38 = vpop.f32.mrb[14].mxu0 }
 0x520   : > { %v1162_v39 = vpop.f32.mrb[15].mxu0  ;;  %v790_v40 = vpop.f32.mrb[12].mxu1 }
 0x521   : > { %849 = vrot.lane.b32.xlu1 %v790_v40, %s1455_s15  ;;  %v1167_v41 = vpop.f32.mrb[13].mxu1 }
 0x522   : > { %v793_v42 = vpop.f32.mrb[14].mxu1 }
 0x523   : > { %v1168_v43 = vpop.f32.mrb[15].mxu1 }
 0x525   : > { %v838_v44 = vpop.f32.mrb[16].mxu0 }
 0x526   : > { %853 = vrot.lane.b32.xlu0 %v838_v44, %s1456_s19  ;;  %v1173_v45 = vpop.f32.mrb[17].mxu0  ;;  %s1788_s19 = scalar_lea.hbm %s1840_s7, %s1094_s22 }
 0x527   : > { %v841_v46 = vpop.f32.mrb[18].mxu0 }
 0x528   : > { %v1174_v0 = vpop.f32.mrb[19].mxu0 }
 0x590   : > { %v846_v47 = vpop.permute.xlu0 %845 }
 0x591   : > { %v856_v49 = vsel %vm412_vm2, %v694_v30, %v846_v47 }
 0x593   : > { %v850_v48 = vpop.permute.xlu1 %849 }
 0x594   : > { %v858_v50 = vsel %vm857_vm4, %v856_v49, %v850_v48 }
 0x598   : > { %v854_v51 = vpop.permute.xlu0 %853 }
 0x599   : > { %v860_v52 = vsel %vm859_vm5, %v858_v50, %v854_v51 }
 0x59a   : > { %v861_v53 = vpack.c.bf16 %v860_v52, %v860_v52 }
 0x59c   : > { %1180 = vmatmul.mubr.msk.bf16.vlgmr.msra.gmra.mrb[16].mxu1 %vm349_vm1, %v861_v53 }
 0x66f   : > { %v922_v55 = vpop.f32.mrb[16].mxu1 }
 0x670   : > { %v923_v56 = vadd.f32 %v1087_v54, %v922_v55  ;;  %v1181_v57 = vpop.f32.mrb[17].mxu1 }
 0x671   : > { %v925_v58 = vpop.f32.mrb[18].mxu1 }
 0x672   : > { %v1182_v59 = vpop.f32.mrb[19].mxu1  ;;  %v928_v60 = vadd.f32 %v923_v56, %v1687_v3  ;;  %v1091_v3 = vld [vmem:[%s1838_s5] ss:$0 sm:$0xff] }
 0x674   : > { %v929_v61 = vsel %vm349_vm1, %v928_v60, 0.0 }
 0x675   : > { %930 = vadd.xlane.f32.xlu1 %v929_v61 }
 0x702   : > { %v931_v62 = vpop.xlane.xlu1 %930 }
 0x703   : > { %v933_v63 = vmul.f32 0.03125, %v931_v62 }
 0x705   : > { %v934_v1 = vsub.f32 %v928_v60, %v933_v63 }
 0x707   : > { %v935_v2 = vmul.f32 %v934_v1, %v934_v1 }
 0x709   : > { %v936_v4 = vsel %vm349_vm1, %v935_v2, 0.0 }
 0x70a   : > { %937 = vadd.xlane.f32.xlu0 %v936_v4 }
 0x797   : > { %v938_v5 = vpop.xlane.xlu0 %937 }
 0x798   : > { %v939_v6 = vmul.f32 0.03125, %v938_v5 }
 0x79a   : > { %v940_v7 = vadd.f32 1e-12, %v939_v6 }
 0x79c   : > { %1282 = vrsqrt.f32 %v940_v7 }
 0x7a6   : > { %v1283_v8 = vpop.eup %1282 }
 0x7a7   : > { %v942_v9 = vmul.f32 %v1283_v8, %v934_v1 }
 0x7a9   : > { %v950_v11 = vmul.f32 %v1091_v3, %v942_v9 }
 0x7ab   : > { %v958_v12 = vadd.f32 %v1092_v10, %v950_v11 }
 0x7ad   : > { %959 = vst.msk [vmem:[%s322_s10] sm:$0xff] %vm349_vm1, %v958_v12 }
 0x7ae   : > { %1383 = shalt.err (!%p1380_p2)
}
 0x7af   : > { %s1384_s12 = scalar_lea.hbm %s1788_s19, 128  ;;  %s1388_s11 = scalar_lea.hbm %s1840_s7, 256 }
 0x7b0   : > { %p1385_p13 = scmp.ne.s32.totalorder %s1788_s19, %s1384_s12  ;;  %p1389_p4 = scmp.lt.u32.totalorder %s1788_s19, %s1840_s7 }
 0x7b1   : > { %p1390_p5 = scmp.lt.u32.totalorder %s1388_s11, %s1384_s12  ;;  %p1392_p11 = scmp.lt.u32.totalorder %s1384_s12, %s1788_s19 }
 0x7b2   : > { %p1386_p6 = pnand %p1385_p13, %p1854_p0 }
 0x7b3   : > { %p1391_p8 = por %p1390_p5, %p1389_p4 }
 0x7b4   : > { %p1387_p10 = pneg %p1386_p6 }
 0x7b5   : > { %p1393_p1 = por %p1392_p11, %p1391_p8 }
 0x7b7   : > { %p1394_p3 = pnand %p1393_p1, %p1387_p10 }
 0x7b9   : > { %1397 = shalt.err (!%p1394_p3)
}
 0x7ba   : > { %1193 = dma.vmem_to_hbm [thread:$0]  (%p1854_p0), %s1790_s18, 128, %s1788_s19, %s961_s23  }
 0x7bb PF: > { %s986_s21 = sand.u32 1, %s1428_s24   ;;  %p1855_p7 = scmp.ne.s32.totalorder %s1845_s8, 0 }
 0x7bc   : > { %p1856_p9 = scmp.ge.s32.totalorder %s1440_s27, 2  ;;  %s987_s15 = scalar_lea.sflag [#allocation4], %s986_s21 }
 0x7be   : > { %p1207_p12 = pnand %p1856_p9, %p1855_p7 }
 0x7c0   : > { %1423 = dma.done.wait (!%p1207_p12), %s987_s15, 128  }
 0x7c1   : > { %1425 = vsyncadd (!%p1207_p12), %s987_s15, 4294967168  ;;  %p21_p2 = scmp.ge.s32.totalorder %s1608_s13, 4   ;;  %s1857_s24 = smov %s1432_s25 }
 0x7c2   : > { %s1858_s25 = smov %s1436_s26  ;;  %s1859_s26 = smov %s1624_s17 }
 0x7c3   : > { %s1860_s27 = smov %s1608_s13  ;;  %23 = sbr.rel (!%p21_p2) target bundleno = 6 (0x6), region = 101 }
 0x7ca   :  { %992 = vsyncpa [#allocation3], 1 }
 0x7cb   :  { %994 = vsyncpa [#allocation3 + $0x1], 1 }
 0x7cc   :  { %995 = vsyncpa [#allocation6], 1 }
 0x7cd   :  { %996 = vsyncpa [#allocation4], 1 }
 0x7ce   :  { %998 = vsyncpa [#allocation4 + $0x1], 1 }

</bundles_post_ra>
